<compile_context>
chip_gen: v7x
topology: tpu7x:2x2x1
jax: 0.10.0
libtpu: 0.0.40
codegen_flags: <defaults>
</compile_context>

<pallas_src>
import functools

import jax
import jax.numpy as jnp
from jax.experimental import pallas as pl
from jax.experimental.pallas import tpu as pltpu


_GELU_C = 0.7978845608028654  # sqrt(2 / pi)


def _round_up(x, m):
    return ((x + m - 1) // m) * m


def _physical_vmem_bytes():
    try:
        info = pltpu.get_tpu_info()
        for attr in ("vmem_capacity_bytes", "vmem_bytes", "vmem_size_bytes"):
            v = getattr(info, attr, None)
            if v:
                return int(v)
    except Exception:
        pass
    return 64 * 1024 * 1024  # conservative default (v7x-sized)


def _choose_tiling(M, C, H, x_itemsize, out_itemsize,
                   block_m, block_hc, block_h, budget):
    """Returns (tm, hc, n_per): M tile, in-kernel hidden chunk, chunks per grid block."""
    # Hidden chunk: largest multiple of 128 <= block_hc that divides H, else H.
    if H % 128 == 0:
        hc = max(128, (min(block_hc, H) // 128) * 128)
        while hc > 128 and H % hc != 0:
            hc -= 128
        if H % hc != 0:
            hc = H
    else:
        hc = H
    n_total = H // hc
    max_per = n_total if block_h is None else max(1, min(n_total, block_h // hc))

    # M tile: biggest 8-aligned tile <= block_m; prefer one dividing M exactly
    # (avoids a wrapper-side pad copy) and an even tile count (v7x megacore).
    tm = min(block_m, _round_up(M, 8))
    if M > tm and M % tm != 0:
        for cand in range(tm, 0, -8):
            if M % cand == 0:
                if 2 * cand >= tm:
                    tm = cand
                break
    n_m = pl.cdiv(M, tm)
    if n_m > 1 and n_m % 2 == 1 and tm % 16 == 0 and M % (tm // 2) == 0:
        tm //= 2

    def fixed_bytes(tm_):
        # x (2 bufs) + out (2 bufs) + f32 acc + in-kernel bf16 x copy + live h.
        return tm_ * (C * (2 * x_itemsize + 2 * out_itemsize + 4 + 2) + hc * 6)

    def weight_bytes(n_per):
        # W1 + W2 tiles, bf16, double-buffered by the pipeline.
        return 2 * (2 * n_per * hc * C * 2)

    while True:
        avail = budget - fixed_bytes(tm)
        if avail > 0:
            for d in range(max_per, 0, -1):
                if n_total % d == 0 and weight_bytes(d) <= avail:
                    return tm, hc, d
        if tm > 8:
            tm = max(8, ((tm // 2) + 7) // 8 * 8)
        elif hc > 128 and hc % 256 == 0:
            hc //= 2
            n_total = H // hc
            max_per = n_total if block_h is None else max(1, min(n_total, block_h // hc))
        else:
            return tm, hc, 1  # minimal config; let the compiler try


def mlp_kernel(x_ref, w1_ref, b1_ref, w2_ref, b2_ref, o_ref, acc_ref):
    # x_ref : (tm, C)         input dtype (cast to bf16 in-kernel)
    # w1_ref: (n_per, hc, C)  bf16  -- c_fc.weight rows, chunked along H
    # b1_ref: (n_per, 1, hc)  f32
    # w2_ref: (n_per, hc, C)  bf16  -- c_proj.weight.T rows, chunked along H
    # b2_ref: (1, C)          f32
    # o_ref : (tm, C)         output dtype
    # acc_ref: (tm, C)        f32 scratch, resident across grid axis 1
    j = pl.program_id(1)

    @pl.when(j == 0)
    def _():
        acc_ref[...] = jnp.zeros_like(acc_ref)

    x = x_ref[...].astype(w1_ref.dtype)          # bf16 for the MXU
    n_per = w1_ref.shape[0]

    def chunk(c, carry):
        # c_fc slice: (tm, C) . (hc, C)^T -> (tm, hc), f32 accumulate on the MXU.
        h = jax.lax.dot_general(
            x, w1_ref[c], (((1,), (1,)), ((), ())),
            preferred_element_type=jnp.float32)
        h = h + b1_ref[c]
        # tanh-approx GELU, elementwise math in f32 (VPU/EUP safe on v5e).
        h = 0.5 * h * (1.0 + jnp.tanh(_GELU_C * (h + 0.044715 * h * h * h)))
        # c_proj partial: (tm, hc) @ (hc, C) accumulated into (tm, C).
        acc_ref[...] += jnp.dot(h.astype(w2_ref.dtype), w2_ref[c],
                                preferred_element_type=jnp.float32)
        return carry

    if n_per == 1:
        chunk(0, 0)
    else:
        jax.lax.fori_loop(0, n_per, chunk, 0)

    @pl.when(j == pl.num_programs(1) - 1)
    def _():
        o_ref[...] = (acc_ref[...] + b2_ref[...]).astype(o_ref.dtype)


@functools.partial(jax.jit, static_argnames=("block_m", "block_hc", "block_h"))
def mlp_pallas(x, w1, b1, w2, b2, *, block_m=1024, block_hc=512, block_h=None):
    """Fused nanoGPT MLP:  gelu_tanh(x @ w1.T + b1) @ w2 + b2.

    x : (B, T, C)
    w1: (4C, C)  -- PyTorch c_fc.weight layout
    b1: (4C,)    -- c_fc.bias
    w2: (4C, C)  -- c_proj.weight.T  (JAX layout of the second matmul)
    b2: (C,)     -- c_proj.bias
    """
    B, T, C = x.shape
    H, C1 = w1.shape
    assert C1 == C and w2.shape == (H, C) and b1.shape == (H,) and b2.shape == (C,)
    M = B * T
    out_dtype = x.dtype
    mxu_dtype = jnp.bfloat16

    phys_vmem = _physical_vmem_bytes()
    vmem_limit = int(phys_vmem * 0.8)        # headroom for compiler scratch
    tile_budget = int(vmem_limit * 0.85)

    tm, hc, n_per = _choose_tiling(
        M, C, H, x.dtype.itemsize, jnp.dtype(out_dtype).itemsize,
        block_m, block_hc, block_h, tile_budget)
    n_total = H // hc
    grid_j = n_total // n_per
    M_pad = _round_up(M, tm)
    n_m = M_pad // tm

    x2d = x.reshape(M, C)
    if M_pad != M:
        x2d = jnp.pad(x2d, ((0, M_pad - M), (0, 0)))

    # Free reshapes: both weights chunk along H on their leading axis.
    w1r = w1.astype(mxu_dtype).reshape(n_total, hc, C)
    w2r = w2.astype(mxu_dtype).reshape(n_total, hc, C)
    b1r = b1.astype(jnp.float32).reshape(n_total, 1, hc)
    b2r = b2.astype(jnp.float32).reshape(1, C)

    w_bytes = (w1r.size + w2r.size) * 2                     # bf16 weights
    weight_streams = n_m if grid_j > 1 else 1               # re-streamed per M tile?
    cost = pl.CostEstimate(
        flops=4 * M_pad * C * H,                            # two (M,C,H) matmuls
        transcendentals=M_pad * H,                          # tanh per hidden elem
        bytes_accessed=(x2d.size * x2d.dtype.itemsize
                        + w_bytes * weight_streams
                        + b1r.size * 4 + b2r.size * 4
                        + M_pad * C * jnp.dtype(out_dtype).itemsize),
    )

    out2d = pl.pallas_call(
        mlp_kernel,
        out_shape=jax.ShapeDtypeStruct((M_pad, C), out_dtype),
        grid_spec=pltpu.PrefetchScalarGridSpec(
            num_scalar_prefetch=0,
            grid=(n_m, grid_j),
            in_specs=[
                pl.BlockSpec((tm, C), lambda i, j: (i, 0)),            # x tile
                pl.BlockSpec((n_per, hc, C), lambda i, j: (j, 0, 0)),  # W1 chunks
                pl.BlockSpec((n_per, 1, hc), lambda i, j: (j, 0, 0)),  # b1 chunks
                pl.BlockSpec((n_per, hc, C), lambda i, j: (j, 0, 0)),  # W2 chunks
                pl.BlockSpec((1, C), lambda i, j: (0, 0)),             # b2
            ],
            out_specs=pl.BlockSpec((tm, C), lambda i, j: (i, 0)),      # resident over j
            scratch_shapes=[pltpu.VMEM((tm, C), jnp.float32)],
        ),
        compiler_params=pltpu.CompilerParams(
            dimension_semantics=("parallel", "arbitrary"),
            vmem_limit_bytes=vmem_limit,
        ),
        cost_estimate=cost,
    )(x2d, w1r, b1r, w2r, b2r)

    return out2d[:M].reshape(B, T, C)


def gelu_tanh_ref(x):
    return 0.5 * x * (1.0 + jnp.tanh(_GELU_C * (x + 0.044715 * x * x * x)))


def mlp_ref(x, w1, b1, w2, b2, mm_dtype):
    """Reference with matmuls in mm_dtype, f32 accumulate / elementwise."""
    B, T, C = x.shape
    x2d = x.reshape(B * T, C).astype(mm_dtype)
    h = jnp.dot(x2d, w1.T.astype(mm_dtype),
                preferred_element_type=jnp.float32) + b1
    h = gelu_tanh_ref(h)
    o = jnp.dot(h.astype(mm_dtype), w2.astype(mm_dtype),
                preferred_element_type=jnp.float32) + b2
    return o.astype(x.dtype).reshape(B, T, C)


def _make_params(key, C, H):
    k1, kb1, k2, kb2 = jax.random.split(key, 4)
    s_in, s_hid = 1.0 / (C ** 0.5), 1.0 / (H ** 0.5)
    # nn.Linear-style uniform(-1/sqrt(fan_in), 1/sqrt(fan_in)) init.
    w1 = jax.random.uniform(k1, (H, C), jnp.float32, -s_in, s_in)   # c_fc.weight
    b1 = jax.random.uniform(kb1, (H,), jnp.float32, -s_in, s_in)    # c_fc.bias
    w2 = jax.random.uniform(k2, (H, C), jnp.float32, -s_hid, s_hid)  # c_proj.weight.T
    b2 = jax.random.uniform(kb2, (C,), jnp.float32, -s_hid, s_hid)   # c_proj.bias
    return w1, b1, w2, b2


if __name__ == "__main__":
    key = jax.random.PRNGKey(0)
    k1, k2, k3 = jax.random.split(key, 3)

    # --- Case 1: module-sized config (n_embd = 32 -> hidden = 128) ---
    B, T, C = 2, 8, 32
    H = 4 * C
    x = jax.random.normal(k1, (B, T, C), dtype=jnp.float32)
    w1, b1, w2, b2 = _make_params(k2, C, H)

    out = mlp_pallas(x, w1, b1, w2, b2)
    jax.block_until_ready(out)
    assert out.shape == (B, T, C)

    ref_bf16 = mlp_ref(x, w1, b1, w2, b2, jnp.bfloat16)   # identical MXU math
    assert jnp.allclose(out, ref_bf16, atol=2e-3, rtol=2e-3), "mismatch vs bf16 ref"
    ref_f32 = mlp_ref(x, w1, b1, w2, b2, jnp.float32)     # pure f32 math
    assert jnp.allclose(out, ref_f32, atol=3e-2, rtol=3e-2), "mismatch vs f32 ref"

    # --- Case 2: exercise M tiling, in-kernel chunk loop, and the grid
    #     reduction (weight streaming) path with small tiles ---
    B2, T2, C2 = 2, 64, 128
    H2 = 4 * C2
    x2 = jax.random.normal(k3, (B2, T2, C2), dtype=jnp.float32)
    w1b, b1b, w2b, b2b = _make_params(jax.random.PRNGKey(1), C2, H2)

    out_a = mlp_pallas(x2, w1b, b1b, w2b, b2b, block_m=64, block_hc=128)
    out_b = mlp_pallas(x2, w1b, b1b, w2b, b2b, block_m=64, block_hc=128, block_h=128)
    jax.block_until_ready((out_a, out_b))
    ref2 = mlp_ref(x2, w1b, b1b, w2b, b2b, jnp.float32)
    assert jnp.allclose(out_a, ref2, atol=3e-2, rtol=3e-2), "case2 resident mismatch"
    assert jnp.allclose(out_b, ref2, atol=3e-2, rtol=3e-2), "case2 streamed mismatch"
    assert jnp.allclose(out_a, out_b, atol=1e-4, rtol=1e-4), "tiling paths disagree"

    print("KERNEL_OK")
</pallas_src>

<mosaic_0001>
module attributes {stable_mosaic.version = 11 : i64} {
  func.func @mlp_kernel(%arg0: i32, %arg1: i32, %arg2: memref<16x32xf32, #tpu.memory_space<vmem>>, %arg3: memref<1x128x32xbf16, #tpu.memory_space<vmem>>, %arg4: memref<1x1x128xf32, #tpu.memory_space<vmem>>, %arg5: memref<1x128x32xbf16, #tpu.memory_space<vmem>>, %arg6: memref<1x32xf32, #tpu.memory_space<vmem>>, %arg7: memref<16x32xf32, #tpu.memory_space<vmem>>, %arg8: memref<16x32xf32, #tpu.memory_space<vmem>>) attributes {dimension_semantics = [#tpu.dimension_semantics<parallel>, #tpu.dimension_semantics<arbitrary>], iteration_bounds = array<i64: 1, 1>, scalar_prefetch = 0 : i64, scratch_operands = 1 : i64, tpu.core_type = #tpu.core_type<tc>, window_params = [{transform_indices = @transform_0, window_bounds = array<i64: 16, 32>}, {transform_indices = @transform_1, window_bounds = array<i64: 1, 128, 32>}, {transform_indices = @transform_2, window_bounds = array<i64: 1, 1, 128>}, {transform_indices = @transform_3, window_bounds = array<i64: 1, 128, 32>}, {pipeline_mode = #tpu.pipeline_mode<synchronous>, transform_indices = @transform_4, window_bounds = array<i64: 1, 32>}, {transform_indices = @transform_5, window_bounds = array<i64: 16, 32>}]} {
    %c0_i32 = arith.constant 0 : i32
    %0 = arith.cmpi eq, %arg1, %c0_i32 : i32
    %1 = arith.extui %0 : i1 to i32
    %c0_i32_0 = arith.constant 0 : i32
    %2 = arith.cmpi ne, %1, %c0_i32_0 : i32
    scf.if %2 {
      %cst_22 = arith.constant 0.000000e+00 : f32
      %35 = vector.broadcast %cst_22 : f32 to vector<16x32xf32>
      %c0_23 = arith.constant 0 : index
      %c0_24 = arith.constant 0 : index
      %36 = vector.load %arg8[%c0_23, %c0_24] : memref<16x32xf32, #tpu.memory_space<vmem>>, vector<16x32xf32>
      tpu.vector_store %arg8[%c0_23, %c0_24], %35 {strides = array<i32>} : memref<16x32xf32, #tpu.memory_space<vmem>>, vector<16x32xf32>,
    } else {
    }
    %c0 = arith.constant 0 : index
    %c0_1 = arith.constant 0 : index
    %3 = vector.load %arg2[%c0, %c0_1] : memref<16x32xf32, #tpu.memory_space<vmem>>, vector<16x32xf32>
    %4 = arith.truncf %3 : vector<16x32xf32> to vector<16x32xbf16>
    %c0_2 = arith.constant 0 : index
    %c0_3 = arith.constant 0 : index
    %c0_4 = arith.constant 0 : index
    %5 = vector.load %arg3[%c0_2, %c0_3, %c0_4] : memref<1x128x32xbf16, #tpu.memory_space<vmem>>, vector<1x128x32xbf16>
    %6 = vector.shape_cast %5 : vector<1x128x32xbf16> to vector<128x32xbf16>
    %cst = arith.constant dense<0.000000e+00> : vector<16x128xf32>
    %7 = tpu.matmul %4, %6, %cst {dimension_numbers = #tpu.dot_dimension_numbers<[1], [1], [0], [0], [0, 0, 1, 0], [], []>} : vector<16x32xbf16>, vector<128x32xbf16>, vector<16x128xf32> -> vector<16x128xf32>
    %c0_5 = arith.constant 0 : index
    %c0_6 = arith.constant 0 : index
    %c0_7 = arith.constant 0 : index
    %8 = vector.load %arg4[%c0_5, %c0_6, %c0_7] : memref<1x1x128xf32, #tpu.memory_space<vmem>>, vector<1x1x128xf32>
    %9 = vector.shape_cast %8 : vector<1x1x128xf32> to vector<1x128xf32>
    %10 = vector.broadcast %9 : vector<1x128xf32> to vector<16x128xf32>
    %11 = arith.addf %7, %10 : vector<16x128xf32>
    %cst_8 = arith.constant 5.000000e-01 : f32
    %12 = vector.broadcast %cst_8 : f32 to vector<16x128xf32>
    %13 = arith.mulf %12, %11 : vector<16x128xf32>
    %cst_9 = arith.constant 4.471500e-02 : f32
    %14 = vector.broadcast %cst_9 : f32 to vector<16x128xf32>
    %15 = arith.mulf %14, %11 : vector<16x128xf32>
    %16 = arith.mulf %15, %11 : vector<16x128xf32>
    %17 = arith.mulf %16, %11 : vector<16x128xf32>
    %18 = arith.addf %11, %17 : vector<16x128xf32>
    %cst_10 = arith.constant 0.797884583 : f32
    %19 = vector.broadcast %cst_10 : f32 to vector<16x128xf32>
    %20 = arith.mulf %19, %18 : vector<16x128xf32>
    %21 = math.tanh %20 : vector<16x128xf32>
    %cst_11 = arith.constant 1.000000e+00 : f32
    %22 = vector.broadcast %cst_11 : f32 to vector<16x128xf32>
    %23 = arith.addf %22, %21 : vector<16x128xf32>
    %24 = arith.mulf %13, %23 : vector<16x128xf32>
    %c0_12 = arith.constant 0 : index
    %c0_13 = arith.constant 0 : index
    %25 = vector.load %arg8[%c0_12, %c0_13] : memref<16x32xf32, #tpu.memory_space<vmem>>, vector<16x32xf32>
    %26 = arith.truncf %24 : vector<16x128xf32> to vector<16x128xbf16>
    %c0_14 = arith.constant 0 : index
    %c0_15 = arith.constant 0 : index
    %c0_16 = arith.constant 0 : index
    %27 = vector.load %arg5[%c0_14, %c0_15, %c0_16] : memref<1x128x32xbf16, #tpu.memory_space<vmem>>, vector<1x128x32xbf16>
    %28 = vector.shape_cast %27 : vector<1x128x32xbf16> to vector<128x32xbf16>
    %cst_17 = arith.constant dense<0.000000e+00> : vector<16x32xf32>
    %29 = tpu.matmul %26, %28, %cst_17 {dimension_numbers = #tpu.dot_dimension_numbers<[1], [0], [0], [1], [0, 0, 1, 1], [], []>} : vector<16x128xbf16>, vector<128x32xbf16>, vector<16x32xf32> -> vector<16x32xf32>
    %30 = arith.addf %25, %29 : vector<16x32xf32>
    %c0_18 = arith.constant 0 : index
    %c0_19 = arith.constant 0 : index
    %31 = vector.load %arg8[%c0_18, %c0_19] : memref<16x32xf32, #tpu.memory_space<vmem>>, vector<16x32xf32>
    tpu.vector_store %arg8[%c0_18, %c0_19], %30 {strides = array<i32>} : memref<16x32xf32, #tpu.memory_space<vmem>>, vector<16x32xf32>,
    %c0_i32_20 = arith.constant 0 : i32
    %32 = arith.cmpi eq, %arg1, %c0_i32_20 : i32
    %33 = arith.extui %32 : i1 to i32
    %c0_i32_21 = arith.constant 0 : i32
    %34 = arith.cmpi ne, %33, %c0_i32_21 : i32
    scf.if %34 {
      %c0_22 = arith.constant 0 : index
      %c0_23 = arith.constant 0 : index
      %35 = vector.load %arg8[%c0_22, %c0_23] : memref<16x32xf32, #tpu.memory_space<vmem>>, vector<16x32xf32>
      %c0_24 = arith.constant 0 : index
      %c0_25 = arith.constant 0 : index
      %36 = vector.load %arg6[%c0_24, %c0_25] : memref<1x32xf32, #tpu.memory_space<vmem>>, vector<1x32xf32>
      %37 = vector.broadcast %36 : vector<1x32xf32> to vector<16x32xf32>
      %38 = arith.addf %35, %37 : vector<16x32xf32>
      %c0_26 = arith.constant 0 : index
      %c0_27 = arith.constant 0 : index
      %39 = vector.load %arg7[%c0_26, %c0_27] : memref<16x32xf32, #tpu.memory_space<vmem>>, vector<16x32xf32>
      tpu.vector_store %arg7[%c0_26, %c0_27], %38 {strides = array<i32>} : memref<16x32xf32, #tpu.memory_space<vmem>>, vector<16x32xf32>,
    } else {
    }
    return
  }
  func.func @transform_0(%arg0: i32, %arg1: i32) -> (i32, i32) {
    %c0_i32 = arith.constant 0 : i32
    %c0_i32_0 = arith.constant 0 : i32
    return %arg0, %c0_i32 : i32, i32
  }
  func.func @transform_1(%arg0: i32, %arg1: i32) -> (i32, i32, i32) {
    %c0_i32 = arith.constant 0 : i32
    %c0_i32_0 = arith.constant 0 : i32
    %c0_i32_1 = arith.constant 0 : i32
    return %arg1, %c0_i32, %c0_i32_0 : i32, i32, i32
  }
  func.func @transform_2(%arg0: i32, %arg1: i32) -> (i32, i32, i32) {
    %c0_i32 = arith.constant 0 : i32
    %c0_i32_0 = arith.constant 0 : i32
    %c0_i32_1 = arith.constant 0 : i32
    return %arg1, %c0_i32, %c0_i32_0 : i32, i32, i32
  }
  func.func @transform_3(%arg0: i32, %arg1: i32) -> (i32, i32, i32) {
    %c0_i32 = arith.constant 0 : i32
    %c0_i32_0 = arith.constant 0 : i32
    %c0_i32_1 = arith.constant 0 : i32
    return %arg1, %c0_i32, %c0_i32_0 : i32, i32, i32
  }
  func.func @transform_4(%arg0: i32, %arg1: i32) -> (i32, i32) {
    %c0_i32 = arith.constant 0 : i32
    %c0_i32_0 = arith.constant 0 : i32
    %c0_i32_1 = arith.constant 0 : i32
    return %c0_i32, %c0_i32_0 : i32, i32
  }
  func.func @transform_5(%arg0: i32, %arg1: i32) -> (i32, i32) {
    %c0_i32 = arith.constant 0 : i32
    %c0_i32_0 = arith.constant 0 : i32
    return %arg0, %c0_i32 : i32, i32
  }
}

</mosaic_0001>

<bundles_post_ra>
// kernel: mlp_pallas.1
= control target key start
LH: loop header
LB: loop body
LE: loop exit
PB: predicated region body
PF: predicated region fallthrough
CT: control target
= control target key end

     0   :  { %vm26_vm0 = vcmask 261120   ;;  %v452_v0 = vmov 0.0   ;;  %vm453_vm1 = vmmov 0   ;;  %s594_s0 = inlined_call_operand.vmem [shape: f32[16,32], index: 0, kind: input, shape index: {}]   ;;  %s595_s1 = inlined_call_operand.vmem [shape: bf16[1,128,32], index: 1, kind: input, shape index: {}]   ;;  %s596_s2 = inlined_call_operand.vmem [shape: f32[1,1,128], index: 2, kind: input, shape index: {}]   ;;  %s597_s3 = inlined_call_operand.vmem [shape: bf16[1,128,32], index: 3, kind: input, shape index: {}]   ;;  %s598_s4 = inlined_call_operand.vmem [shape: f32[1,32], index: 4, kind: input, shape index: {}]   ;;  %s599_s5 = inlined_call_operand.hbm [shape: f32[16,32], index: 5, kind: output, shape index: {}]  }
   0x1   :  { %363 = vmatprep.subr.bf16.mxu0 %v452_v0  ;;  %v408_v1 = vld [vmem:[%s595_s1] sm:$0xff]   ;;  %27 = vst.msk [vmem:[#allocation2] sm:$0xff] %vm26_vm0, %v452_v0  ;;  %28 = vst.msk [vmem:[#allocation2 + $0x8] sm:$0xff] %vm26_vm0, %v452_v0  ;;  %383 = vmatprep.subr.bf16.mxu1 %v452_v0  ;;  %v409_v3 = vld [vmem:[%s595_s1 + $0x8] sm:$0xff]  }
   0x2   :  { %379 = vmatprep.mubr.msk.bf16.mxu0 %vm453_vm1, %v452_v0  ;;  %399 = vmatprep.mubr.msk.bf16.mxu1 %vm453_vm1, %v452_v0  ;;  %v100_v2 = vsel %vm26_vm0, %v408_v1, 0  ;;  %v103_v4 = vsel %vm26_vm0, %v409_v3, 0  ;;  %v410_v5 = vld [vmem:[%s595_s1 + $0x10] sm:$0xff]  }
   0x3   :  { %364 = vmatpush3.bf16.xpose.msra.mxu0 %v100_v2 }
   0x4   :  { %365 = vmatprep.subr.bf16.mxu0 %v452_v0 }
   0xb   :  { %366 = vmatpush3.bf16.xpose.msra.mxu0 %v103_v4 }
   0xc   :  { %367 = vmatprep.subr.bf16.mxu0 %v452_v0 }
   0xd   :  { %10 = vsyncpa [#allocation4], 0  ;;  %v106_v6 = vsel %vm26_vm0, %v410_v5, 0  ;;  %v411_v7 = vld [vmem:[%s595_s1 + $0x18] sm:$0xff]   ;;  %v412_v9 = vld [vmem:[%s595_s1 + $0x20] sm:$0xff]   ;;  %s454_s29 = smov [#allocation3]  }
   0xe   :  { %v109_v8 = vsel %vm26_vm0, %v411_v7, 0  ;;  %v112_v10 = vsel %vm26_vm0, %v412_v9, 0  ;;  %v413_v11 = vld [vmem:[%s595_s1 + $0x28] sm:$0xff]   ;;  %v414_v13 = vld [vmem:[%s595_s1 + $0x30] sm:$0xff]   ;;  %v415_v15 = vld [vmem:[%s595_s1 + $0x38] sm:$0xff]   ;;  %s315_s30 = sshll.u32 %s454_s29, 4  ;;  %s316_s30 = int_to_ptr.vmem [resolvable:$true] %s315_s30 }
   0xf   :  { %v115_v12 = vsel %vm26_vm0, %v413_v11, 0  ;;  %v118_v14 = vsel %vm26_vm0, %v414_v13, 0  ;;  %v121_v16 = vsel %vm26_vm0, %v415_v15, 0  ;;  %v29_v17 = vld [vmem:[%s594_s0] sm:$0xff]  ;;  %v30_v18 = vld [vmem:[%s594_s0 + $0x8] sm:$0xff]  ;;  %v418_v22 = vld [vmem:[%s597_s3 + $0x10] sm:$0xff]   ;;  %p433_p1 = scmp.lt.s32.totalorder %s316_s30, %s316_s30 }
  0x10   :  { %v31_v19 = vpack.c.bf16 %v30_v18, %v29_v17  ;;  %v416_v20 = vld [vmem:[%s597_s3] sm:$0xff]   ;;  %v417_v21 = vld [vmem:[%s597_s3 + $0x8] sm:$0xff]   ;;  %v419_v23 = vld [vmem:[%s597_s3 + $0x18] sm:$0xff]   ;;  %s428_s6 = scalar_lea.vmem %s316_s30, 256 }
  0x11   :  { %384 = vmatpush3.bf16.msra.mxu1 %v416_v20  ;;  %v420_v24 = vld [vmem:[%s597_s3 + $0x20] sm:$0xff]   ;;  %v421_v25 = vld [vmem:[%s597_s3 + $0x28] sm:$0xff]   ;;  %v422_v26 = vld [vmem:[%s597_s3 + $0x30] sm:$0xff]   ;;  %p429_p0 = scmp.ne.s32.totalorder %s316_s30, %s428_s6  ;;  %p434_p2 = scmp.lt.s32.totalorder %s428_s6, %s428_s6 }
  0x12   :  { %385 = vmatprep.subr.bf16.mxu1 %v452_v0  ;;  %v423_v27 = vld [vmem:[%s597_s3 + $0x38] sm:$0xff]   ;;  %v326_v28 = vld [vmem:[%s596_s2] ss:$0 sm:$0xff]  ;;  %v183_v56 = vld [vmem:[#allocation2 + $0x8] sm:$0xff] }
  0x13   :  { %368 = vmatpush3.bf16.xpose.msra.mxu0 %v106_v6  ;;  %v182_v54 = vld [vmem:[#allocation2] sm:$0xff]  ;;  %p435_p3 = por %p434_p2, %p433_p1 }
  0x14   :  { %369 = vmatprep.subr.bf16.mxu0 %v452_v0  ;;  %v344_v62 = vld [vmem:[%s598_s4] ss:$0 sm:$0xff] }
  0x15   :  { %386 = vmatpush3.bf16.msra.mxu1 %v417_v21  ;;  %p436_p4 = pnand %p435_p3, %p429_p0 }
  0x16   :  { %387 = vmatprep.subr.bf16.mxu1 %v452_v0 }
  0x19   :  { %388 = vmatpush3.bf16.msra.mxu1 %v418_v22 }
  0x1a   :  { %389 = vmatprep.subr.bf16.mxu1 %v452_v0 }
  0x1b   :  { %370 = vmatpush3.bf16.xpose.msra.mxu0 %v109_v8 }
  0x1c   :  { %371 = vmatprep.subr.bf16.mxu0 %v452_v0 }
  0x1d   :  { %390 = vmatpush3.bf16.msra.mxu1 %v419_v23 }
  0x1e   :  { %391 = vmatprep.subr.bf16.mxu1 %v452_v0 }
  0x21   :  { %392 = vmatpush3.bf16.msra.mxu1 %v420_v24 }
  0x22   :  { %393 = vmatprep.subr.bf16.mxu1 %v452_v0 }
  0x23   :  { %372 = vmatpush3.bf16.xpose.msra.mxu0 %v112_v10 }
  0x24   :  { %373 = vmatprep.subr.bf16.mxu0 %v452_v0 }
  0x25   :  { %394 = vmatpush3.bf16.msra.mxu1 %v421_v25 }
  0x26   :  { %395 = vmatprep.subr.bf16.mxu1 %v452_v0 }
  0x29   :  { %396 = vmatpush3.bf16.msra.mxu1 %v422_v26 }
  0x2a   :  { %397 = vmatprep.subr.bf16.mxu1 %v452_v0 }
  0x2b   :  { %374 = vmatpush3.bf16.xpose.msra.mxu0 %v115_v12 }
  0x2c   :  { %375 = vmatprep.subr.bf16.mxu0 %v452_v0 }
  0x2d   :  { %398 = vmatpush3.bf16.msra.mxu1 %v423_v27 }
  0x33   :  { %376 = vmatpush3.bf16.xpose.msra.mxu0 %v118_v14 }
  0x34   :  { %377 = vmatprep.subr.bf16.mxu0 %v452_v0 }
  0x3b   :  { %378 = vmatpush3.bf16.xpose.msra.mxu0 %v121_v16 }
  0x42   :  { %380 = vmatmul.mubr.msk.bf16.vlgmr.msra.gmra.mrb[0].mxu0 %vm26_vm0, %v31_v19 }
 0x115   :  { %v157_v29 = vpop.f32.mrb[0].mxu0 }
 0x116   :  { %v158_v30 = vadd.f32 %v326_v28, %v157_v29  ;;  %v381_v31 = vpop.f32.mrb[1].mxu0 }
 0x117   :  { %v160_v32 = vpop.f32.mrb[2].mxu0 }
 0x118   :  { %v166_v33 = vmul.f32 0.044715, %v158_v30  ;;  %v161_v34 = vadd.f32 %v326_v28, %v160_v32  ;;  %v382_v35 = vpop.f32.mrb[3].mxu0  ;;  %v164_v48 = vmul.f32 0.5, %v158_v30 }
 0x11a   :  { %v168_v36 = vmul.f32 %v166_v33, %v158_v30  ;;  %v167_v37 = vmul.f32 0.044715, %v161_v34  ;;  %v165_v49 = vmul.f32 0.5, %v161_v34 }
 0x11c   :  { %v170_v38 = vmul.f32 %v168_v36, %v158_v30  ;;  %v169_v39 = vmul.f32 %v167_v37, %v161_v34 }
 0x11e   :  { %v171_v40 = vmul.f32 %v169_v39, %v161_v34  ;;  %v172_v41 = vadd.f32 %v170_v38, %v158_v30 }
 0x120   :  { %v173_v42 = vadd.f32 %v171_v40, %v161_v34  ;;  %v174_v43 = vmul.f32 0.7978846, %v172_v41 }
 0x122   :  { %v175_v44 = vmul.f32 0.7978846, %v173_v42  ;;  %424 = vtanh.f32 %v174_v43 }
 0x124   :  { %426 = vtanh.f32 %v175_v44 }
 0x12c   :  { %v425_v45 = vpop.eup %424 }
 0x12d   :  { %v178_v46 = vadd.f32 1.0, %v425_v45 }
 0x12e   :  { %v427_v47 = vpop.eup %426 }
 0x12f   :  { %v179_v50 = vadd.f32 1.0, %v427_v47  ;;  %v180_v51 = vmul.f32 %v178_v46, %v164_v48 }
 0x131   :  { %v181_v52 = vmul.f32 %v179_v50, %v165_v49 }
 0x133   :  { %v184_v53 = vpack.c.bf16 %v181_v52, %v180_v51 }
 0x135   :  { %400 = vmatmul.mubr.bf16.vlgmr.msra.gmra.mrb[0].mxu1 %v184_v53 }
 0x208   :  { %v283_v55 = vpop.f32.mrb[0].mxu1 }
 0x209   :  { %v290_v57 = vadd.f32 %v283_v55, %v182_v54  ;;  %v401_v58 = vpop.f32.mrb[1].mxu1 }
 0x20a   :  { %v286_v59 = vpop.f32.mrb[2].mxu1 }
 0x20b   :  { %292 = vst.msk [vmem:[#allocation2] sm:$0xff] %vm26_vm0, %v290_v57  ;;  %v291_v60 = vadd.f32 %v286_v59, %v183_v56  ;;  %v402_v61 = vpop.f32.mrb[3].mxu1 }
 0x20d   :  { %293 = vst.msk [vmem:[#allocation2 + $0x8] sm:$0xff] %vm26_vm0, %v291_v60 }
 0x212   :  { %v297_v63 = vld [vmem:[#allocation2] sm:$0xff] }
 0x213   :  { %v306_v0 = vadd.f32 %v344_v62, %v297_v63 }
 0x214   :  { %v298_v1 = vld [vmem:[#allocation2 + $0x8] sm:$0xff] }
 0x215   :  { %v307_v2 = vadd.f32 %v344_v62, %v298_v1  ;;  %308 = vst.msk [vmem:[#allocation3] sm:$0xff] %vm26_vm0, %v306_v0 }
 0x217   :  { %309 = vst.msk [vmem:[#allocation3 + $0x8] sm:$0xff] %vm26_vm0, %v307_v2 }
 0x218   :  { %439 = shalt.err (!%p436_p4)
}
 0x219   :  { %s440_s8 = scalar_lea.hbm %s599_s5, 256 }
 0x21a   :  { %p441_p5 = scmp.ne.s32.totalorder %s599_s5, %s440_s8  ;;  %p444_p6 = scmp.lt.u32.totalorder %s440_s8, %s599_s5 }
 0x21c   :  { %p446_p7 = pnand %p444_p6, %p441_p5 }
 0x21e   :  { %449 = shalt.err (!%p446_p7)
}
 0x21f   :  { %s455_s13 = smov 128   ;;  %s456_s14 = smov 8  }
 0x220   :  { %321 = dma.vmem_to_hbm [thread:$0]  %s316_s30, 256, %s599_s5, [#allocation4], %s455_s13, %s455_s13, %s456_s14  }
 0x221   :  { %450 = dma.done.wait [#allocation4], 256  }
 0x222   :  { %451 = vsyncadd [#allocation4], 4294967040 }
 0x223   :  { %325 = vsyncpa [#allocation4], 1 }

</bundles_post_ra>
